<compile_context>
chip_gen: v7x
topology: tpu7x:2x2x1
jax: 0.10.0
libtpu: 0.0.40
codegen_flags: <defaults>
</compile_context>

<pallas_src>
import functools
import math

import jax
import jax.numpy as jnp
from jax import lax
from jax.experimental import pallas as pl
from jax.experimental.pallas import tpu as pltpu

_LANES = 128
_SUBLANES = 8
_MAX_TILE_ROWS = 2048   # 2048 x 128 f32 = 1 MiB per input block per buffer

_P_LO = 1e-7
_P_HI = 1.0 - 1e-7
_LOG_P_LO = math.log(_P_LO)
_LOG_P_HI = math.log(_P_HI)


def _dice_bce_partial_kernel(x_ref, t_ref, o_ref, acc_ref, *,
                             total_n, tile_rows, tiles_per_core):
    c = pl.program_id(0)   # core axis ("parallel")
    j = pl.program_id(1)   # streaming reduction axis ("arbitrary")

    @pl.when(j == 0)
    def _():
        acc_ref[...] = jnp.zeros_like(acc_ref)

    x = x_ref[...].astype(jnp.float32)
    t = t_ref[...].astype(jnp.float32)

    # One exp + one log per element (EUP is the scarce slot).  Clamping the
    # logs is equivalent to the reference's clip-then-log (log is monotone).
    e = jnp.exp(-x)
    denom = 1.0 + e
    p = jnp.clip(1.0 / denom, _P_LO, _P_HI)              # sigmoid, clamped
    log_denom = jnp.log(denom)
    log_p = jnp.clip(-log_denom, _LOG_P_LO, _LOG_P_HI)    # log(sigmoid(x))
    log_1mp = jnp.clip(-log_denom - x, _LOG_P_LO, _LOG_P_HI)  # log(1-sigmoid(x))

    ch_pt = p * t                                      # intersection terms
    ch_sum = p + t                                     # sum(p) + sum(t), joint
    ch_bce = -(t * (log_p - log_1mp) + log_1mp)        # per-element BCE

    def fold(a):
        # (tile_rows, 128) -> (8, 128) via pure vreg-wise VPU adds (no XLU).
        return a.reshape(tile_rows // _SUBLANES, _SUBLANES, _LANES).sum(axis=0)

    gt = c * tiles_per_core + j                        # logical (unclamped) tile id
    tile_elems = tile_rows * _LANES
    # TODO(synk): int32 tile_start/gidx overflows for inputs > ~2^31 elements.
    tile_start = gt * tile_elems

    @pl.when(tile_start + tile_elems <= total_n)
    def _():
        # Steady state: full tile, no masking work at all.
        acc_ref[0] += fold(ch_pt)
        acc_ref[1] += fold(ch_sum)
        acc_ref[2] += fold(ch_bce)

    @pl.when(tile_start + tile_elems > total_n)
    def _():
        # Edge tile (or a fully-out-of-range tile that re-reads the last block
        # due to the clamped index_map): mask out everything past total_n.
        row_ids = lax.broadcasted_iota(jnp.int32, x.shape, 0)
        lane_ids = lax.broadcasted_iota(jnp.int32, x.shape, 1)
        valid = (tile_start + row_ids * _LANES + lane_ids) < total_n
        zero = jnp.zeros_like(x)
        acc_ref[0] += fold(jnp.where(valid, ch_pt, zero))
        acc_ref[1] += fold(jnp.where(valid, ch_sum, zero))
        acc_ref[2] += fold(jnp.where(valid, ch_bce, zero))

    @pl.when(j == tiles_per_core - 1)
    def _():
        o_ref[0] = acc_ref[...]


def dice_bce_loss(inputs, targets, smooth=1.0, bce_weight=0.5):
    """0.5 * BCE(sigmoid(inputs), targets) + 0.5 * DiceLoss, scalar f32."""
    assert inputs.shape == targets.shape, "inputs/targets must match in shape"
    x = jnp.ravel(inputs)
    t = jnp.ravel(targets)
    n = x.shape[0]

    # Pad so the (rows, 128) view has rows % 8 == 0 (needed by the in-kernel
    # fold). Padding elements are masked out in-kernel; this copy only triggers
    # when numel % 1024 != 0 (not the case for typical NCHW segmentation shapes).
    pad = (-n) % (_SUBLANES * _LANES)
    if pad:
        x = jnp.pad(x, (0, pad))
        t = jnp.pad(t, (0, pad))
    rows = (n + pad) // _LANES
    x2 = x.reshape(rows, _LANES)
    t2 = t.reshape(rows, _LANES)

    tile_rows = min(_MAX_TILE_ROWS, rows)
    num_tiles = (rows + tile_rows - 1) // tile_rows
    num_cores = 2 if num_tiles >= 2 else 1           # 2 TCs on v7x; harmless on 1-TC chips
    tiles_per_core = (num_tiles + num_cores - 1) // num_cores
    num_row_blocks = num_tiles                       # blocks actually present along axis 0

    def in_index_map(c, j):
        # Clamp so a fully-out-of-range logical tile re-reads a valid block;
        # its contribution is masked to zero in-kernel.
        return (jnp.minimum(c * tiles_per_core + j, num_row_blocks - 1), 0)

    kernel = functools.partial(
        _dice_bce_partial_kernel,
        total_n=n,
        tile_rows=tile_rows,
        tiles_per_core=tiles_per_core,
    )

    partials = pl.pallas_call(
        kernel,
        out_shape=jax.ShapeDtypeStruct((num_cores, 3, _SUBLANES, _LANES),
                                       jnp.float32),
        grid_spec=pltpu.PrefetchScalarGridSpec(
            num_scalar_prefetch=0,
            grid=(num_cores, tiles_per_core),
            in_specs=[
                pl.BlockSpec((tile_rows, _LANES), in_index_map),
                pl.BlockSpec((tile_rows, _LANES), in_index_map),
            ],
            out_specs=pl.BlockSpec((1, 3, _SUBLANES, _LANES),
                                   lambda c, j: (c, 0, 0, 0)),
            scratch_shapes=[pltpu.VMEM((3, _SUBLANES, _LANES), jnp.float32)],
        ),
        compiler_params=pltpu.CompilerParams(
            dimension_semantics=("parallel", "arbitrary"),
        ),
    )(x2, t2)

    # Tiny final combine (2*3*8*128 values) + scalar formula in plain JAX.
    sums = jnp.sum(partials, axis=(0, 2, 3))         # [sum(p*t), sum(p)+sum(t), sum(bce)]
    s_pt, s_p_plus_t, s_bce = sums[0], sums[1], sums[2]
    dice = 1.0 - (2.0 * s_pt + smooth) / (s_p_plus_t + smooth)
    bce = s_bce / jnp.float32(n)
    return bce_weight * bce + (1.0 - bce_weight) * dice


def _reference(inputs, targets, smooth=1.0, bce_weight=0.5):
    p = jax.nn.sigmoid(inputs.astype(jnp.float32))
    p = jnp.clip(p, 1e-7, 1.0 - 1e-7).ravel()
    t = targets.astype(jnp.float32).ravel()
    intersection = jnp.sum(p * t)
    dice = 1.0 - (2.0 * intersection + smooth) / (jnp.sum(p) + jnp.sum(t) + smooth)
    bce = jnp.mean(-(t * jnp.log(p) + (1.0 - t) * jnp.log(1.0 - p)))
    return bce_weight * bce + (1.0 - bce_weight) * dice


if __name__ == "__main__":
    key = jax.random.PRNGKey(0)
    k1, k2 = jax.random.split(key)
    # Segmentation-style inputs: logits + binary ground-truth masks (NCHW).
    inputs = jax.random.normal(k1, (2, 4, 16, 16), dtype=jnp.float32)
    targets = (jax.random.uniform(k2, (2, 4, 16, 16)) > 0.5).astype(jnp.float32)

    loss = jax.block_until_ready(dice_bce_loss(inputs, targets))
    ref = jax.block_until_ready(_reference(inputs, targets))

    assert jnp.allclose(loss, ref, rtol=1e-5, atol=1e-6), (loss, ref)
    print("KERNEL_OK")
</pallas_src>

<mosaic_0001>
module attributes {stable_mosaic.version = 11 : i64} {
  func.func @_dice_bce_partial_kernel(%arg0: i32, %arg1: i32, %arg2: memref<16x128xf32, #tpu.memory_space<vmem>>, %arg3: memref<16x128xf32, #tpu.memory_space<vmem>>, %arg4: memref<1x3x8x128xf32, #tpu.memory_space<vmem>>, %arg5: memref<3x8x128xf32, #tpu.memory_space<vmem>>) attributes {dimension_semantics = [#tpu.dimension_semantics<parallel>, #tpu.dimension_semantics<arbitrary>], iteration_bounds = array<i64: 1, 1>, scalar_prefetch = 0 : i64, scratch_operands = 1 : i64, tpu.core_type = #tpu.core_type<tc>, window_params = [{transform_indices = @transform_0, window_bounds = array<i64: 16, 128>}, {transform_indices = @transform_1, window_bounds = array<i64: 16, 128>}, {transform_indices = @transform_2, window_bounds = array<i64: 1, 3, 8, 128>}]} {
    %c0_i32 = arith.constant 0 : i32
    %0 = arith.cmpi eq, %arg1, %c0_i32 : i32
    %1 = arith.extui %0 : i1 to i32
    %c0_i32_0 = arith.constant 0 : i32
    %2 = arith.cmpi ne, %1, %c0_i32_0 : i32
    scf.if %2 {
      %cst_23 = arith.constant 0.000000e+00 : f32
      %51 = vector.broadcast %cst_23 : f32 to vector<3x8x128xf32>
      %c0_24 = arith.constant 0 : index
      %c0_25 = arith.constant 0 : index
      %c0_26 = arith.constant 0 : index
      %52 = vector.load %arg5[%c0_24, %c0_25, %c0_26] : memref<3x8x128xf32, #tpu.memory_space<vmem>>, vector<3x8x128xf32>
      tpu.vector_store %arg5[%c0_24, %c0_25, %c0_26], %51 {strides = array<i32>} : memref<3x8x128xf32, #tpu.memory_space<vmem>>, vector<3x8x128xf32>,
    } else {
    }
    %c0 = arith.constant 0 : index
    %c0_1 = arith.constant 0 : index
    %3 = vector.load %arg2[%c0, %c0_1] : memref<16x128xf32, #tpu.memory_space<vmem>>, vector<16x128xf32>
    %c0_2 = arith.constant 0 : index
    %c0_3 = arith.constant 0 : index
    %4 = vector.load %arg3[%c0_2, %c0_3] : memref<16x128xf32, #tpu.memory_space<vmem>>, vector<16x128xf32>
    %cst = arith.constant 0.000000e+00 : f32
    %5 = vector.broadcast %cst : f32 to vector<16x128xf32>
    %6 = arith.subf %5, %3 : vector<16x128xf32>
    %7 = math.exp %6 : vector<16x128xf32>
    %cst_4 = arith.constant 1.000000e+00 : f32
    %8 = vector.broadcast %cst_4 : f32 to vector<16x128xf32>
    %9 = arith.addf %8, %7 : vector<16x128xf32>
    %cst_5 = arith.constant 1.000000e+00 : f32
    %10 = vector.broadcast %cst_5 : f32 to vector<16x128xf32>
    %11 = arith.divf %10, %9 : vector<16x128xf32>
    %cst_6 = arith.constant 1.000000e-07 : f32
    %cst_7 = arith.constant 0.99999988 : f32
    %12 = vector.broadcast %cst_6 : f32 to vector<16x128xf32>
    %13 = arith.maximumf %12, %11 : vector<16x128xf32>
    %14 = vector.broadcast %cst_7 : f32 to vector<16x128xf32>
    %15 = arith.minimumf %14, %13 : vector<16x128xf32>
    %16 = math.log %9 : vector<16x128xf32>
    %cst_8 = arith.constant 0.000000e+00 : f32
    %17 = vector.broadcast %cst_8 : f32 to vector<16x128xf32>
    %18 = arith.subf %17, %16 : vector<16x128xf32>
    %cst_9 = arith.constant -16.1180954 : f32
    %cst_10 = arith.constant -1.00000008E-7 : f32
    %19 = vector.broadcast %cst_9 : f32 to vector<16x128xf32>
    %20 = arith.maximumf %19, %18 : vector<16x128xf32>
    %21 = vector.broadcast %cst_10 : f32 to vector<16x128xf32>
    %22 = arith.minimumf %21, %20 : vector<16x128xf32>
    %cst_11 = arith.constant 0.000000e+00 : f32
    %23 = vector.broadcast %cst_11 : f32 to vector<16x128xf32>
    %24 = arith.subf %23, %16 : vector<16x128xf32>
    %25 = arith.subf %24, %3 : vector<16x128xf32>
    %cst_12 = arith.constant -16.1180954 : f32
    %cst_13 = arith.constant -1.00000008E-7 : f32
    %26 = vector.broadcast %cst_12 : f32 to vector<16x128xf32>
    %27 = arith.maximumf %26, %25 : vector<16x128xf32>
    %28 = vector.broadcast %cst_13 : f32 to vector<16x128xf32>
    %29 = arith.minimumf %28, %27 : vector<16x128xf32>
    %30 = arith.mulf %15, %4 : vector<16x128xf32>
    %31 = arith.addf %15, %4 : vector<16x128xf32>
    %32 = arith.subf %22, %29 : vector<16x128xf32>
    %33 = arith.mulf %4, %32 : vector<16x128xf32>
    %34 = arith.addf %33, %29 : vector<16x128xf32>
    %cst_14 = arith.constant 0.000000e+00 : f32
    %35 = vector.broadcast %cst_14 : f32 to vector<16x128xf32>
    %36 = arith.subf %35, %34 : vector<16x128xf32>
    %c1_i32 = arith.constant 1 : i32
    %37 = arith.muli %arg0, %c1_i32 : i32
    %38 = arith.addi %37, %arg1 : i32
    %c2048_i32 = arith.constant 2048 : i32
    %39 = arith.muli %38, %c2048_i32 : i32
    %c2048_i32_15 = arith.constant 2048 : i32
    %40 = arith.addi %39, %c2048_i32_15 : i32
    %c2048_i32_16 = arith.constant 2048 : i32
    %41 = arith.cmpi sle, %40, %c2048_i32_16 : i32
    %42 = arith.extui %41 : i1 to i32
    %c0_i32_17 = arith.constant 0 : i32
    %43 = arith.cmpi ne, %42, %c0_i32_17 : i32
    scf.if %43 {
      %c0_23 = arith.constant 0 : index
      %c0_24 = arith.constant 0 : index
      %c0_25 = arith.constant 0 : index
      %51 = vector.load %arg5[%c0_23, %c0_24, %c0_25] : memref<3x8x128xf32, #tpu.memory_space<vmem>>, vector<1x8x128xf32>
      %52 = vector.shape_cast %51 : vector<1x8x128xf32> to vector<8x128xf32>
      %53 = vector.shape_cast %30 : vector<16x128xf32> to vector<2x8x128xf32>
      %cst_26 = arith.constant dense<0.000000e+00> : vector<8x128xf32>
      %54 = vector.multi_reduction <add>, %53, %cst_26 [0] : vector<2x8x128xf32> to vector<8x128xf32>
      %55 = arith.addf %52, %54 : vector<8x128xf32>
      %c0_27 = arith.constant 0 : index
      %c0_28 = arith.constant 0 : index
      %c0_29 = arith.constant 0 : index
      %56 = vector.load %arg5[%c0_27, %c0_28, %c0_29] : memref<3x8x128xf32, #tpu.memory_space<vmem>>, vector<1x8x128xf32>
      %57 = vector.shape_cast %56 : vector<1x8x128xf32> to vector<8x128xf32>
      %58 = vector.shape_cast %55 : vector<8x128xf32> to vector<1x8x128xf32>
      tpu.vector_store %arg5[%c0_27, %c0_28, %c0_29], %58 {strides = array<i32>} : memref<3x8x128xf32, #tpu.memory_space<vmem>>, vector<1x8x128xf32>,
      %c1 = arith.constant 1 : index
      %c0_30 = arith.constant 0 : index
      %c0_31 = arith.constant 0 : index
      %59 = vector.load %arg5[%c1, %c0_30, %c0_31] : memref<3x8x128xf32, #tpu.memory_space<vmem>>, vector<1x8x128xf32>
      %60 = vector.shape_cast %59 : vector<1x8x128xf32> to vector<8x128xf32>
      %61 = vector.shape_cast %31 : vector<16x128xf32> to vector<2x8x128xf32>
      %cst_32 = arith.constant dense<0.000000e+00> : vector<8x128xf32>
      %62 = vector.multi_reduction <add>, %61, %cst_32 [0] : vector<2x8x128xf32> to vector<8x128xf32>
      %63 = arith.addf %60, %62 : vector<8x128xf32>
      %c1_33 = arith.constant 1 : index
      %c0_34 = arith.constant 0 : index
      %c0_35 = arith.constant 0 : index
      %64 = vector.load %arg5[%c1_33, %c0_34, %c0_35] : memref<3x8x128xf32, #tpu.memory_space<vmem>>, vector<1x8x128xf32>
      %65 = vector.shape_cast %64 : vector<1x8x128xf32> to vector<8x128xf32>
      %66 = vector.shape_cast %63 : vector<8x128xf32> to vector<1x8x128xf32>
      tpu.vector_store %arg5[%c1_33, %c0_34, %c0_35], %66 {strides = array<i32>} : memref<3x8x128xf32, #tpu.memory_space<vmem>>, vector<1x8x128xf32>,
      %c2 = arith.constant 2 : index
      %c0_36 = arith.constant 0 : index
      %c0_37 = arith.constant 0 : index
      %67 = vector.load %arg5[%c2, %c0_36, %c0_37] : memref<3x8x128xf32, #tpu.memory_space<vmem>>, vector<1x8x128xf32>
      %68 = vector.shape_cast %67 : vector<1x8x128xf32> to vector<8x128xf32>
      %69 = vector.shape_cast %36 : vector<16x128xf32> to vector<2x8x128xf32>
      %cst_38 = arith.constant dense<0.000000e+00> : vector<8x128xf32>
      %70 = vector.multi_reduction <add>, %69, %cst_38 [0] : vector<2x8x128xf32> to vector<8x128xf32>
      %71 = arith.addf %68, %70 : vector<8x128xf32>
      %c2_39 = arith.constant 2 : index
      %c0_40 = arith.constant 0 : index
      %c0_41 = arith.constant 0 : index
      %72 = vector.load %arg5[%c2_39, %c0_40, %c0_41] : memref<3x8x128xf32, #tpu.memory_space<vmem>>, vector<1x8x128xf32>
      %73 = vector.shape_cast %72 : vector<1x8x128xf32> to vector<8x128xf32>
      %74 = vector.shape_cast %71 : vector<8x128xf32> to vector<1x8x128xf32>
      tpu.vector_store %arg5[%c2_39, %c0_40, %c0_41], %74 {strides = array<i32>} : memref<3x8x128xf32, #tpu.memory_space<vmem>>, vector<1x8x128xf32>,
    } else {
    }
    %c2048_i32_18 = arith.constant 2048 : i32
    %44 = arith.addi %39, %c2048_i32_18 : i32
    %c2048_i32_19 = arith.constant 2048 : i32
    %45 = arith.cmpi sgt, %44, %c2048_i32_19 : i32
    %46 = arith.extui %45 : i1 to i32
    %c0_i32_20 = arith.constant 0 : i32
    %47 = arith.cmpi ne, %46, %c0_i32_20 : i32
    scf.if %47 {
      %51 = tpu.iota {dimensions = array<i32: 0>} : vector<16x128xi32>
      %52 = tpu.iota {dimensions = array<i32: 1>} : vector<16x128xi32>
      %c128_i32 = arith.constant 128 : i32
      %53 = vector.broadcast %c128_i32 : i32 to vector<16x128xi32>
      %54 = arith.muli %51, %53 : vector<16x128xi32>
      %55 = vector.broadcast %39 : i32 to vector<16x128xi32>
      %56 = arith.addi %55, %54 : vector<16x128xi32>
      %57 = arith.addi %56, %52 : vector<16x128xi32>
      %c2048_i32_23 = arith.constant 2048 : i32
      %58 = vector.broadcast %c2048_i32_23 : i32 to vector<16x128xi32>
      %59 = arith.cmpi slt, %57, %58 : vector<16x128xi32>
      %cst_24 = arith.constant 0.000000e+00 : f32
      %60 = vector.broadcast %cst_24 : f32 to vector<16x128xf32>
      %c0_25 = arith.constant 0 : index
      %c0_26 = arith.constant 0 : index
      %c0_27 = arith.constant 0 : index
      %61 = vector.load %arg5[%c0_25, %c0_26, %c0_27] : memref<3x8x128xf32, #tpu.memory_space<vmem>>, vector<1x8x128xf32>
      %62 = vector.shape_cast %61 : vector<1x8x128xf32> to vector<8x128xf32>
      %63 = arith.select %59, %30, %60 : vector<16x128xi1>, vector<16x128xf32>
      %64 = vector.shape_cast %63 : vector<16x128xf32> to vector<2x8x128xf32>
      %cst_28 = arith.constant dense<0.000000e+00> : vector<8x128xf32>
      %65 = vector.multi_reduction <add>, %64, %cst_28 [0] : vector<2x8x128xf32> to vector<8x128xf32>
      %66 = arith.addf %62, %65 : vector<8x128xf32>
      %c0_29 = arith.constant 0 : index
      %c0_30 = arith.constant 0 : index
      %c0_31 = arith.constant 0 : index
      %67 = vector.load %arg5[%c0_29, %c0_30, %c0_31] : memref<3x8x128xf32, #tpu.memory_space<vmem>>, vector<1x8x128xf32>
      %68 = vector.shape_cast %67 : vector<1x8x128xf32> to vector<8x128xf32>
      %69 = vector.shape_cast %66 : vector<8x128xf32> to vector<1x8x128xf32>
      tpu.vector_store %arg5[%c0_29, %c0_30, %c0_31], %69 {strides = array<i32>} : memref<3x8x128xf32, #tpu.memory_space<vmem>>, vector<1x8x128xf32>,
      %c1 = arith.constant 1 : index
      %c0_32 = arith.constant 0 : index
      %c0_33 = arith.constant 0 : index
      %70 = vector.load %arg5[%c1, %c0_32, %c0_33] : memref<3x8x128xf32, #tpu.memory_space<vmem>>, vector<1x8x128xf32>
      %71 = vector.shape_cast %70 : vector<1x8x128xf32> to vector<8x128xf32>
      %72 = arith.select %59, %31, %60 : vector<16x128xi1>, vector<16x128xf32>
      %73 = vector.shape_cast %72 : vector<16x128xf32> to vector<2x8x128xf32>
      %cst_34 = arith.constant dense<0.000000e+00> : vector<8x128xf32>
      %74 = vector.multi_reduction <add>, %73, %cst_34 [0] : vector<2x8x128xf32> to vector<8x128xf32>
      %75 = arith.addf %71, %74 : vector<8x128xf32>
      %c1_35 = arith.constant 1 : index
      %c0_36 = arith.constant 0 : index
      %c0_37 = arith.constant 0 : index
      %76 = vector.load %arg5[%c1_35, %c0_36, %c0_37] : memref<3x8x128xf32, #tpu.memory_space<vmem>>, vector<1x8x128xf32>
      %77 = vector.shape_cast %76 : vector<1x8x128xf32> to vector<8x128xf32>
      %78 = vector.shape_cast %75 : vector<8x128xf32> to vector<1x8x128xf32>
      tpu.vector_store %arg5[%c1_35, %c0_36, %c0_37], %78 {strides = array<i32>} : memref<3x8x128xf32, #tpu.memory_space<vmem>>, vector<1x8x128xf32>,
      %c2 = arith.constant 2 : index
      %c0_38 = arith.constant 0 : index
      %c0_39 = arith.constant 0 : index
      %79 = vector.load %arg5[%c2, %c0_38, %c0_39] : memref<3x8x128xf32, #tpu.memory_space<vmem>>, vector<1x8x128xf32>
      %80 = vector.shape_cast %79 : vector<1x8x128xf32> to vector<8x128xf32>
      %81 = arith.select %59, %36, %60 : vector<16x128xi1>, vector<16x128xf32>
      %82 = vector.shape_cast %81 : vector<16x128xf32> to vector<2x8x128xf32>
      %cst_40 = arith.constant dense<0.000000e+00> : vector<8x128xf32>
      %83 = vector.multi_reduction <add>, %82, %cst_40 [0] : vector<2x8x128xf32> to vector<8x128xf32>
      %84 = arith.addf %80, %83 : vector<8x128xf32>
      %c2_41 = arith.constant 2 : index
      %c0_42 = arith.constant 0 : index
      %c0_43 = arith.constant 0 : index
      %85 = vector.load %arg5[%c2_41, %c0_42, %c0_43] : memref<3x8x128xf32, #tpu.memory_space<vmem>>, vector<1x8x128xf32>
      %86 = vector.shape_cast %85 : vector<1x8x128xf32> to vector<8x128xf32>
      %87 = vector.shape_cast %84 : vector<8x128xf32> to vector<1x8x128xf32>
      tpu.vector_store %arg5[%c2_41, %c0_42, %c0_43], %87 {strides = array<i32>} : memref<3x8x128xf32, #tpu.memory_space<vmem>>, vector<1x8x128xf32>,
    } else {
    }
    %c0_i32_21 = arith.constant 0 : i32
    %48 = arith.cmpi eq, %arg1, %c0_i32_21 : i32
    %49 = arith.extui %48 : i1 to i32
    %c0_i32_22 = arith.constant 0 : i32
    %50 = arith.cmpi ne, %49, %c0_i32_22 : i32
    scf.if %50 {
      %c0_23 = arith.constant 0 : index
      %c0_24 = arith.constant 0 : index
      %c0_25 = arith.constant 0 : index
      %51 = vector.load %arg5[%c0_23, %c0_24, %c0_25] : memref<3x8x128xf32, #tpu.memory_space<vmem>>, vector<3x8x128xf32>
      %c0_26 = arith.constant 0 : index
      %c0_27 = arith.constant 0 : index
      %c0_28 = arith.constant 0 : index
      %c0_29 = arith.constant 0 : index
      %52 = vector.load %arg4[%c0_26, %c0_27, %c0_28, %c0_29] : memref<1x3x8x128xf32, #tpu.memory_space<vmem>>, vector<1x3x8x128xf32>
      %53 = vector.shape_cast %52 : vector<1x3x8x128xf32> to vector<3x8x128xf32>
      %54 = vector.shape_cast %51 : vector<3x8x128xf32> to vector<1x3x8x128xf32>
      tpu.vector_store %arg4[%c0_26, %c0_27, %c0_28, %c0_29], %54 {strides = array<i32>} : memref<1x3x8x128xf32, #tpu.memory_space<vmem>>, vector<1x3x8x128xf32>,
    } else {
    }
    return
  }
  func.func @transform_0(%arg0: i32, %arg1: i32) -> (i32, i32) {
    %c1_i32 = arith.constant 1 : i32
    %0 = arith.muli %arg0, %c1_i32 : i32
    %1 = arith.addi %0, %arg1 : i32
    %c0_i32 = arith.constant 0 : i32
    %2 = arith.minsi %1, %c0_i32 : i32
    %c0_i32_0 = arith.constant 0 : i32
    %c0_i32_1 = arith.constant 0 : i32
    return %2, %c0_i32_0 : i32, i32
  }
  func.func @transform_1(%arg0: i32, %arg1: i32) -> (i32, i32) {
    %c1_i32 = arith.constant 1 : i32
    %0 = arith.muli %arg0, %c1_i32 : i32
    %1 = arith.addi %0, %arg1 : i32
    %c0_i32 = arith.constant 0 : i32
    %2 = arith.minsi %1, %c0_i32 : i32
    %c0_i32_0 = arith.constant 0 : i32
    %c0_i32_1 = arith.constant 0 : i32
    return %2, %c0_i32_0 : i32, i32
  }
  func.func @transform_2(%arg0: i32, %arg1: i32) -> (i32, i32, i32, i32) {
    %c0_i32 = arith.constant 0 : i32
    %c0_i32_0 = arith.constant 0 : i32
    %c0_i32_1 = arith.constant 0 : i32
    %c0_i32_2 = arith.constant 0 : i32
    return %arg0, %c0_i32, %c0_i32_0, %c0_i32_1 : i32, i32, i32, i32
  }
}

</mosaic_0001>

<bundles_post_ra>
// kernel: tpu_custom_call.1
= control target key start
LH: loop header
LB: loop body
LE: loop exit
PB: predicated region body
PF: predicated region fallthrough
CT: control target
= control target key end

     0   :  { %7 = vsyncpa [#allocation4], 0  ;;  %s359_s0 = inlined_call_operand.hbm [shape: f32[16,128], index: 0, kind: input, shape index: {}]   ;;  %s360_s1 = inlined_call_operand.hbm [shape: f32[16,128], index: 1, kind: input, shape index: {}]   ;;  %s361_s2 = inlined_call_operand.hbm [shape: f32[1,3,8,128], index: 2, kind: output, shape index: {}]  }
   0x1   :  { %8 = vsyncpa [#allocation7], 0 }
   0x2   :  { %9 = vsyncpa [#allocation5], 0  ;;  %s294_s9 = smov [#allocation3]   ;;  %s222_s13 = scalar_lea.hbm %s359_s0, 256 }
   0x3   :  { %s21_s10 = sshll.u32 %s294_s9, 4  ;;  %p223_p0 = scmp.ne.s32.totalorder %s359_s0, %s222_s13  ;;  %s22_s10 = int_to_ptr.vmem [resolvable:$true] %s21_s10 }
   0x4   :  { %p226_p1 = scmp.lt.u32.totalorder %s222_s13, %s359_s0 }
   0x6   :  { %p228_p2 = pnand %p226_p1, %p223_p0 }
   0x8   :  { %231 = shalt.err (!%p228_p2)
}
   0x9   :  { %s232_s18 = scalar_lea.vmem %s22_s10, 256  ;;  %p237_p4 = scmp.lt.s32.totalorder %s22_s10, %s22_s10 }
   0xa   :  { %p233_p3 = scmp.ne.s32.totalorder %s22_s10, %s232_s18  ;;  %p238_p5 = scmp.lt.s32.totalorder %s232_s18, %s232_s18 }
   0xc   :  { %p239_p6 = por %p238_p5, %p237_p4 }
   0xe   :  { %p240_p7 = pnand %p239_p6, %p233_p3 }
  0x10   :  { %243 = shalt.err (!%p240_p7)
}
  0x11   :  { %s295_s19 = smov 128   ;;  %s296_s20 = smov 8  }
  0x12   :  { %27 = dma.hbm_to_vmem [thread:$0]  %s359_s0, 256, %s22_s10, [#allocation4], %s295_s19, %s295_s19, %s296_s20  }
  0x13   :  { %s297_s23 = smov [#allocation6]   ;;  %s244_s27 = scalar_lea.hbm %s360_s1, 256 }
  0x14   :  { %s39_s24 = sshll.u32 %s297_s23, 4  ;;  %p245_p8 = scmp.ne.s32.totalorder %s360_s1, %s244_s27  ;;  %s40_s24 = int_to_ptr.vmem [resolvable:$true] %s39_s24 }
  0x15   :  { %p248_p9 = scmp.lt.u32.totalorder %s244_s27, %s360_s1 }
  0x17   :  { %p250_p10 = pnand %p248_p9, %p245_p8 }
  0x19   :  { %253 = shalt.err (!%p250_p10)
}
  0x1a   :  { %s254_s4 = scalar_lea.vmem %s40_s24, 256  ;;  %p259_p12 = scmp.lt.s32.totalorder %s40_s24, %s40_s24 }
  0x1b   :  { %p255_p11 = scmp.ne.s32.totalorder %s40_s24, %s254_s4  ;;  %p260_p13 = scmp.lt.s32.totalorder %s254_s4, %s254_s4 }
  0x1d   :  { %p261_p0 = por %p260_p13, %p259_p12 }
  0x1f   :  { %p262_p1 = pnand %p261_p0, %p255_p11 }
  0x21   :  { %265 = shalt.err (!%p262_p1)
}
  0x22   :  { %45 = dma.hbm_to_vmem [thread:$0]  %s360_s1, 256, %s40_s24, [#allocation7], %s295_s19, %s295_s19, %s296_s20  }
  0x23   :  { %288 = dma.done.wait [#allocation4], 256  }
  0x24   :  { %289 = vsyncadd [#allocation4], 4294967040 }
  0x25   :  { %290 = dma.done.wait [#allocation7], 256  }
  0x26   :  { %291 = vsyncadd [#allocation7], 4294967040  ;;  %v67_v0 = vld [vmem:[#allocation3] sm:$0xff]  ;;  %v68_v1 = vld [vmem:[#allocation3 + $0x8] sm:$0xff]  ;;  %s298_s1 = smov [#allocation8]  }
  0x27   :  { %v71_v2 = vsub.f32 0.0, %v67_v0  ;;  %v72_v3 = vsub.f32 0.0, %v68_v1  ;;  %v69_v18 = vld [vmem:[#allocation6] sm:$0xff]  ;;  %v70_v21 = vld [vmem:[#allocation6 + $0x8] sm:$0xff]  ;;  %s188_s6 = sshll.u32 %s298_s1, 4  ;;  %s189_s6 = int_to_ptr.vmem [resolvable:$true] %s188_s6 }
  0x28   :  { %s266_s7 = scalar_lea.vmem %s189_s6, 384  ;;  %p271_p3 = scmp.lt.s32.totalorder %s189_s6, %s189_s6 }
  0x29   :  { %v73_v4 = vmul.f32 1.442695, %v71_v2  ;;  %v75_v5 = vmul.f32 1.442695, %v72_v3  ;;  %p267_p2 = scmp.ne.s32.totalorder %s189_s6, %s266_s7  ;;  %p272_p4 = scmp.lt.s32.totalorder %s266_s7, %s266_s7 }
  0x2b   :  { %210 = vpow2.f32 %v73_v4  ;;  %p273_p5 = por %p272_p4, %p271_p3 }
  0x2c   :  { %212 = vpow2.f32 %v75_v5 }
  0x2d   :  { %p274_p6 = pnand %p273_p5, %p267_p2 }
  0x35   :  { %v211_v6 = vpop.eup %210 }
  0x36   :  { %v213_v7 = vpop.eup %212  ;;  %v77_v8 = vadd.f32 1.0, %v211_v6 }
  0x37   :  { %v78_v9 = vadd.f32 1.0, %v213_v7 }
  0x38   :  { %214 = vrcp.f32 %v77_v8 }
  0x39   :  { %216 = vrcp.f32 %v78_v9 }
  0x3a   :  { %218 = vlog2.f32 %v77_v8 }
  0x3b   :  { %220 = vlog2.f32 %v78_v9 }
  0x42   :  { %v215_v10 = vpop.eup %214 }
  0x43   :  { %v217_v11 = vpop.eup %216  ;;  %v83_v12 = vmax.f32 %v215_v10, 1e-07 }
  0x44   :  { %v219_v13 = vpop.eup %218  ;;  %v84_v14 = vmax.f32 %v217_v11, 1e-07 }
  0x45   :  { %v221_v15 = vpop.eup %220  ;;  %v85_v16 = vmin.f32 %v83_v12, 0.9999999  ;;  %v88_v17 = vmul.f32 0.6931472, %v219_v13 }
  0x46   :  { %v86_v19 = vmin.f32 %v84_v14, 0.9999999  ;;  %v90_v20 = vmul.f32 0.6931472, %v221_v15 }
  0x47   :  { %v103_v22 = vmul.f32 %v85_v16, %v69_v18  ;;  %v105_v23 = vadd.f32 %v85_v16, %v69_v18  ;;  %v91_v24 = vsub.f32 0.0, %v88_v17 }
  0x48   :  { %v104_v25 = vmul.f32 %v86_v19, %v70_v21  ;;  %v106_v26 = vadd.f32 %v86_v19, %v70_v21  ;;  %v92_v27 = vsub.f32 0.0, %v90_v20 }
  0x49   :  { %v93_v28 = vmax.f32 %v91_v24, -16.118095  ;;  %v97_v29 = vsub.f32 %v91_v24, %v67_v0 }
  0x4a   :  { %v123_v30 = vadd.f32 %v104_v25, %v103_v22  ;;  %v128_v31 = vadd.f32 %v106_v26, %v105_v23  ;;  %v94_v32 = vmax.f32 %v92_v27, -16.118095  ;;  %v98_v33 = vsub.f32 %v92_v27, %v68_v1 }
  0x4b   :  { %v95_v34 = vmin.f32 %v93_v28, -1.0000001e-07  ;;  %v99_v35 = vmax.f32 %v97_v29, -16.118095 }
  0x4c   :  { %180 = vst [vmem:[#allocation8] sm:$0xff] %v123_v30  ;;  %181 = vst [vmem:[#allocation8 + $0x8] sm:$0xff] %v128_v31  ;;  %v96_v36 = vmin.f32 %v94_v32, -1.0000001e-07  ;;  %v100_v37 = vmax.f32 %v98_v33, -16.118095 }
  0x4d   :  { %v101_v38 = vmin.f32 %v99_v35, -1.0000001e-07 }
  0x4e   :  { %v102_v39 = vmin.f32 %v100_v37, -1.0000001e-07 }
  0x4f   :  { %v107_v40 = vsub.f32 %v95_v34, %v101_v38 }
  0x50   :  { %v108_v41 = vsub.f32 %v96_v36, %v102_v39 }
  0x51   :  { %v109_v42 = vmul.f32 %v107_v40, %v69_v18 }
  0x52   :  { %v110_v43 = vmul.f32 %v108_v41, %v70_v21 }
  0x53   :  { %v111_v44 = vadd.f32 %v109_v42, %v101_v38 }
  0x54   :  { %v112_v45 = vadd.f32 %v110_v43, %v102_v39 }
  0x55   :  { %v113_v46 = vsub.f32 0.0, %v111_v44 }
  0x56   :  { %v114_v47 = vsub.f32 0.0, %v112_v45 }
  0x58   :  { %v133_v48 = vadd.f32 %v114_v47, %v113_v46 }
  0x5a   :  { %182 = vst [vmem:[#allocation8 + $0x10] sm:$0xff] %v133_v48 }
  0x5b   :  { %277 = shalt.err (!%p274_p6)
}
  0x5c   :  { %s278_s10 = scalar_lea.hbm %s361_s2, 384 }
  0x5d   :  { %p279_p7 = scmp.ne.s32.totalorder %s361_s2, %s278_s10  ;;  %p282_p8 = scmp.lt.u32.totalorder %s278_s10, %s361_s2 }
  0x5f   :  { %p284_p9 = pnand %p282_p8, %p279_p7 }
  0x61   :  { %287 = shalt.err (!%p284_p9)
}
  0x62   :  { %194 = dma.vmem_to_hbm [thread:$0]  %s189_s6, 384, %s361_s2, [#allocation5], %s295_s19, %s295_s19, %s296_s20  }
  0x63   :  { %292 = dma.done.wait [#allocation5], 384  }
  0x64   :  { %293 = vsyncadd [#allocation5], 4294966912 }
  0x65   :  { %198 = vsyncpa [#allocation4], 1 }
  0x66   :  { %199 = vsyncpa [#allocation7], 1 }
  0x67   :  { %200 = vsyncpa [#allocation5], 1 }

</bundles_post_ra>
